<compile_context>
chip_gen: v7x
topology: tpu7x:2x2x1
jax: 0.10.0
libtpu: 0.0.40
codegen_flags: <defaults>
</compile_context>

<pallas_src>
import functools

import jax
import jax.numpy as jnp
from jax.experimental import pallas as pl
from jax.experimental.pallas import tpu as pltpu


# ----------------------------------------------------------------------------
# Kernels
# ----------------------------------------------------------------------------

def _make_mlp_kernel_rowmajor(n_layers):
    """Fused MLP over one [tb, in_dim] batch tile (batch on sublanes).

    refs = (x_ref, w0_ref, ..., w{n-1}_ref, o_ref).  Each w_ref is the
    augmented [in_l + 1, out_l] matrix whose LAST ROW is the bias.
    """

    def kernel(*refs):
        x_ref = refs[0]
        w_refs = refs[1:1 + n_layers]
        o_ref = refs[1 + n_layers]

        h = x_ref[...]                                        # [tb, in_dim]
        for li in range(n_layers):
            w_ref = w_refs[li]
            nin = w_ref.shape[0] - 1
            # Static Ref slices are free views (no extra VMEM copies).
            h = jnp.dot(h, w_ref[:nin, :],                    # MXU, f32 accumulation
                        preferred_element_type=jnp.float32)
            h = h + w_ref[nin:nin + 1, :].astype(jnp.float32)  # bias add (f32)
            if li < n_layers - 1:
                h = jnp.maximum(h, 0.0)                       # hidden ReLU (f32, v5e-safe)
        o_ref[...] = h.astype(o_ref.dtype)                    # no output activation

    return kernel


def _make_mlp_kernel_featmajor(n_layers):
    """Lane-dense fused MLP over one [in_dim, tb] tile (batch on lanes).

    refs = (x_ref, w0_ref, ..., w{n-1}_ref, o_ref).  Each w_ref is the
    augmented [out_l, in_l + 1] matrix whose LAST COLUMN is the bias.
    """

    def kernel(*refs):
        x_ref = refs[0]
        w_refs = refs[1:1 + n_layers]
        o_ref = refs[1 + n_layers]

        h = x_ref[...]                                        # [in_dim, tb]
        for li in range(n_layers):
            w_ref = w_refs[li]
            nin = w_ref.shape[1] - 1
            h = jnp.dot(w_ref[:, :nin], h,                    # [out, in] @ [in, tb]
                        preferred_element_type=jnp.float32)
            h = h + w_ref[:, nin:nin + 1].astype(jnp.float32)  # bias, bcast over lanes
            if li < n_layers - 1:
                h = jnp.maximum(h, 0.0)
        o_ref[...] = h.astype(o_ref.dtype)

    return kernel


# ----------------------------------------------------------------------------
# Helpers
# ----------------------------------------------------------------------------

def _round_up(v, m):
    return ((v + m - 1) // m) * m


def _pick_tb(B, tile_b, multiple):
    """Batch-tile size: <= tile_b, multiple of `multiple`, preferring an even
    grid size so ("parallel",) splits evenly over v7x's two TensorCores."""
    if B <= tile_b:
        return B          # single block == full extent: always a legal block shape
    tb = max(multiple, (tile_b // multiple) * multiple)
    n = -(-B // tb)
    if n % 2 == 1:        # nudge to an even tile count (harmless on 1-TC chips)
        cand = _round_up(-(-B // (n + 1)), multiple)
        if -(-B // cand) % 2 == 0:
            tb = cand
    return tb


def _mlp_xla(x, params):
    """Plain fused XLA MLP (small-batch fallback).  Same math as the kernel."""
    h = x
    for li, w in enumerate(params):
        h = jnp.dot(h, w[:-1, :], precision="highest",
                    preferred_element_type=jnp.float32) + w[-1:, :]
        if li < len(params) - 1:
            h = jnp.maximum(h, 0.0)
    return h.astype(x.dtype)


# ----------------------------------------------------------------------------
# Public entry points
# ----------------------------------------------------------------------------

@functools.partial(jax.jit, static_argnames=("tile_b", "min_pallas_batch"))
def mlp_forward(x, params, *, tile_b=4096, min_pallas_batch=1024):
    """MLP forward, module-native layout: x [B, in_dim] -> [B, out_dim].

    params: tuple of augmented weights W_aug_l = concat([W_l^T, b_l]) with
    shape [in_l + 1, out_l] (bias as the last row).
    """
    n_layers = len(params)
    B, in_dim = x.shape
    out_dim = params[-1].shape[1]

    # Tiny batches: a plain fused XLA MLP beats custom-call + pipeline setup.
    if B < min_pallas_batch:
        return _mlp_xla(x, params)

    tb = _pick_tb(B, tile_b, 8)
    grid = (pl.cdiv(B, tb),)          # ragged tail block handled by Pallas

    flops = 2 * B * sum((w.shape[0] - 1) * w.shape[1] for w in params)
    bytes_accessed = (x.size * x.dtype.itemsize
                      + sum(w.size * w.dtype.itemsize for w in params)
                      + B * out_dim * x.dtype.itemsize)

    x_spec = pl.BlockSpec((tb, in_dim), lambda i: (i, 0))
    # Constant index_map -> each weight is DMA'd once and stays resident in VMEM.
    w_specs = [pl.BlockSpec(w.shape, lambda i: (0, 0)) for w in params]
    out_spec = pl.BlockSpec((tb, out_dim), lambda i: (i, 0))

    return pl.pallas_call(
        _make_mlp_kernel_rowmajor(n_layers),
        out_shape=jax.ShapeDtypeStruct((B, out_dim), x.dtype),
        grid_spec=pltpu.PrefetchScalarGridSpec(
            num_scalar_prefetch=0,
            grid=grid,
            in_specs=[x_spec] + w_specs,
            out_specs=out_spec,
        ),
        compiler_params=pltpu.CompilerParams(
            dimension_semantics=("parallel",)),   # batch tiles across v7x's 2 TCs
        cost_estimate=pl.CostEstimate(
            flops=flops, transcendentals=0, bytes_accessed=bytes_accessed),
    )(x, *params)


def feature_major_params(params):
    """[in+1, out] (bias last row) -> [out, in+1] (bias last column).

    One-time, tiny; do this upstream and reuse for mlp_forward_feature_major.
    """
    return tuple(jnp.transpose(w) for w in params)


@functools.partial(jax.jit, static_argnames=("tile_b",))
def mlp_forward_feature_major(x_t, params_fm, *, tile_b=8192):
    """Lane-dense MLP forward for data kept feature-major upstream.

    x_t: [in_dim, B] (batch on the lane axis).  Returns [out_dim, B].
    params_fm: tuple of augmented weights [out_l, in_l + 1] (bias last column),
    e.g. from feature_major_params(params).

    With batch on lanes, x / out / intermediate tiles are lane-dense (no 16-32x
    lane padding), output stores are unmasked vst, and every dot fills the MXU
    N axis with the batch.  Per-tile VMEM at tb=8192 f32 is only ~1.5 MiB, so
    much larger tiles fit even on v7x's 64 MiB VMEM.
    """
    n_layers = len(params_fm)
    in_dim, B = x_t.shape
    out_dim = params_fm[-1].shape[0]

    tb = _pick_tb(B, tile_b, 128)     # lane axis: multiples of 128 (or the full extent)
    grid = (pl.cdiv(B, tb),)

    flops = 2 * B * sum(w.shape[0] * (w.shape[1] - 1) for w in params_fm)
    bytes_accessed = (x_t.size * x_t.dtype.itemsize
                      + sum(w.size * w.dtype.itemsize for w in params_fm)
                      + B * out_dim * x_t.dtype.itemsize)

    x_spec = pl.BlockSpec((in_dim, tb), lambda i: (0, i))
    w_specs = [pl.BlockSpec(w.shape, lambda i: (0, 0)) for w in params_fm]
    out_spec = pl.BlockSpec((out_dim, tb), lambda i: (0, i))

    return pl.pallas_call(
        _make_mlp_kernel_featmajor(n_layers),
        out_shape=jax.ShapeDtypeStruct((out_dim, B), x_t.dtype),
        grid_spec=pltpu.PrefetchScalarGridSpec(
            num_scalar_prefetch=0,
            grid=grid,
            in_specs=[x_spec] + w_specs,
            out_specs=out_spec,
        ),
        compiler_params=pltpu.CompilerParams(
            dimension_semantics=("parallel",)),
        cost_estimate=pl.CostEstimate(
            flops=flops, transcendentals=0, bytes_accessed=bytes_accessed),
    )(x_t, *params_fm)


# ----------------------------------------------------------------------------
# Init + reference (validation)
# ----------------------------------------------------------------------------

def init_mlp_params(key, in_dim, out_dim, hidden_layers, gain=1.0, dtype=jnp.float32):
    """Mimics init_param: orthogonal_(weight, gain), bias = 0.

    PyTorch Linear weight is [out, in]; we init orthogonally in that shape,
    transpose to [in, out], and append the (zero) bias as the last row so each
    layer is a single augmented [in+1, out] operand for the row-major kernel.
    """
    dims = [in_dim] + list(hidden_layers) + [out_dim]
    orth = jax.nn.initializers.orthogonal(scale=gain)
    params = []
    for i in range(len(dims) - 1):
        key, sub = jax.random.split(key)
        w_torch = orth(sub, (dims[i + 1], dims[i]), dtype)       # [out, in]
        b_row = jnp.zeros((1, dims[i + 1]), dtype)               # zero bias
        params.append(jnp.concatenate([w_torch.T, b_row], axis=0))  # [in+1, out]
    return tuple(params)


def mlp_reference(x, params):
    """Plain-JAX reference (full-precision matmuls) for validation."""
    h = x
    for li, w in enumerate(params):
        h = jnp.dot(h, w[:-1], precision="highest") + w[-1:]
        if li < len(params) - 1:
            h = jnp.maximum(h, 0.0)
    return h


# ----------------------------------------------------------------------------
# Demo / self-test
# ----------------------------------------------------------------------------

if __name__ == "__main__":
    key = jax.random.PRNGKey(0)
    k_param, k_x1, k_x2 = jax.random.split(key, 3)

    # Small shapes consistent with the module: in_dim=8, hidden=(32, 32), out_dim=4.
    in_dim, out_dim = 8, 4
    hidden_layers = (32, 32)
    params = init_mlp_params(k_param, in_dim, out_dim, hidden_layers, gain=1.0)
    params_fm = feature_major_params(params)

    # 1) Tiny batch (B=8): exercise the Pallas kernel directly (min_pallas_batch=0)
    #    and then the small-batch XLA dispatch.
    x_small = jax.random.normal(k_x1, (8, in_dim), dtype=jnp.float32)
    ref_small = mlp_reference(x_small, params)
    y_small = mlp_forward(x_small, params, min_pallas_batch=0)      # Pallas path
    jax.block_until_ready(y_small)
    assert y_small.shape == (8, out_dim)
    assert jnp.allclose(y_small, ref_small, atol=1e-4, rtol=1e-4), \
        "small-batch Pallas mismatch vs reference"
    y_small_xla = mlp_forward(x_small, params)                      # XLA fallback path
    jax.block_until_ready(y_small_xla)
    assert jnp.allclose(y_small_xla, ref_small, atol=1e-4, rtol=1e-4), \
        "small-batch XLA-fallback mismatch vs reference"

    # 2) Batched row-major path: B=2500 with tile_b=1024 exercises the ragged
    #    tail block (no wrapper pad/slice) and the even-tile-count adjustment
    #    (3 odd tiles of 1024 -> 4 tiles of 632).
    x_big = jax.random.normal(k_x2, (2500, in_dim), dtype=jnp.float32)
    ref_big = mlp_reference(x_big, params)
    y_big = mlp_forward(x_big, params, tile_b=1024)
    jax.block_until_ready(y_big)
    assert y_big.shape == (2500, out_dim)
    assert jnp.allclose(y_big, ref_big, atol=1e-4, rtol=1e-4), \
        "batched row-major mismatch vs reference"

    # 3) Lane-dense feature-major path (batch on lanes), for data already kept
    #    as [in_dim, B] upstream.  tile_b=1024 -> 4 lane tiles of 640 with a
    #    ragged tail.
    y_fm = mlp_forward_feature_major(jnp.transpose(x_big), params_fm, tile_b=1024)
    jax.block_until_ready(y_fm)
    assert y_fm.shape == (out_dim, 2500)
    assert jnp.allclose(jnp.transpose(y_fm), ref_big, atol=1e-4, rtol=1e-4), \
        "feature-major mismatch vs reference"

    print("KERNEL_OK")
</pallas_src>

<mosaic_0001>
module attributes {stable_mosaic.version = 11 : i64} {
  func.func @kernel(%arg0: i32, %arg1: memref<8x8xf32, #tpu.memory_space<vmem>>, %arg2: memref<9x32xf32, #tpu.memory_space<vmem>>, %arg3: memref<33x32xf32, #tpu.memory_space<vmem>>, %arg4: memref<33x4xf32, #tpu.memory_space<vmem>>, %arg5: memref<8x4xf32, #tpu.memory_space<vmem>>) attributes {dimension_semantics = [#tpu.dimension_semantics<parallel>], iteration_bounds = array<i64: 1>, scalar_prefetch = 0 : i64, scratch_operands = 0 : i64, tpu.core_type = #tpu.core_type<tc>, window_params = [{transform_indices = @transform_0, window_bounds = array<i64: 8, 8>}, {pipeline_mode = #tpu.pipeline_mode<synchronous>, transform_indices = @transform_1, window_bounds = array<i64: 9, 32>}, {pipeline_mode = #tpu.pipeline_mode<synchronous>, transform_indices = @transform_2, window_bounds = array<i64: 33, 32>}, {pipeline_mode = #tpu.pipeline_mode<synchronous>, transform_indices = @transform_3, window_bounds = array<i64: 33, 4>}, {transform_indices = @transform_4, window_bounds = array<i64: 8, 4>}]} {
    %c0 = arith.constant 0 : index
    %c0_0 = arith.constant 0 : index
    %0 = vector.load %arg1[%c0, %c0_0] : memref<8x8xf32, #tpu.memory_space<vmem>>, vector<8x8xf32>
    %c0_1 = arith.constant 0 : index
    %c0_2 = arith.constant 0 : index
    %1 = vector.load %arg2[%c0_1, %c0_2] : memref<9x32xf32, #tpu.memory_space<vmem>>, vector<8x32xf32>
    %cst = arith.constant dense<0.000000e+00> : vector<8x32xf32>
    %2 = tpu.matmul %0, %1, %cst {dimension_numbers = #tpu.dot_dimension_numbers<[1], [0], [0], [1], [0, 0, 1, 1], [], []>} : vector<8x8xf32>, vector<8x32xf32>, vector<8x32xf32> -> vector<8x32xf32>
    %c8 = arith.constant 8 : index
    %c0_3 = arith.constant 0 : index
    %3 = vector.load %arg2[%c8, %c0_3] : memref<9x32xf32, #tpu.memory_space<vmem>>, vector<1x32xf32>
    %4 = vector.broadcast %3 : vector<1x32xf32> to vector<8x32xf32>
    %5 = arith.addf %2, %4 : vector<8x32xf32>
    %cst_4 = arith.constant 0.000000e+00 : f32
    %6 = vector.broadcast %cst_4 : f32 to vector<8x32xf32>
    %7 = arith.maximumf %5, %6 : vector<8x32xf32>
    %c0_5 = arith.constant 0 : index
    %c0_6 = arith.constant 0 : index
    %8 = vector.load %arg3[%c0_5, %c0_6] : memref<33x32xf32, #tpu.memory_space<vmem>>, vector<32x32xf32>
    %cst_7 = arith.constant dense<0.000000e+00> : vector<8x32xf32>
    %9 = tpu.matmul %7, %8, %cst_7 {dimension_numbers = #tpu.dot_dimension_numbers<[1], [0], [0], [1], [0, 0, 1, 1], [], []>} : vector<8x32xf32>, vector<32x32xf32>, vector<8x32xf32> -> vector<8x32xf32>
    %c32 = arith.constant 32 : index
    %c0_8 = arith.constant 0 : index
    %10 = vector.load %arg3[%c32, %c0_8] : memref<33x32xf32, #tpu.memory_space<vmem>>, vector<1x32xf32>
    %11 = vector.broadcast %10 : vector<1x32xf32> to vector<8x32xf32>
    %12 = arith.addf %9, %11 : vector<8x32xf32>
    %cst_9 = arith.constant 0.000000e+00 : f32
    %13 = vector.broadcast %cst_9 : f32 to vector<8x32xf32>
    %14 = arith.maximumf %12, %13 : vector<8x32xf32>
    %c0_10 = arith.constant 0 : index
    %c0_11 = arith.constant 0 : index
    %15 = vector.load %arg4[%c0_10, %c0_11] : memref<33x4xf32, #tpu.memory_space<vmem>>, vector<32x4xf32>
    %cst_12 = arith.constant dense<0.000000e+00> : vector<8x4xf32>
    %16 = tpu.matmul %14, %15, %cst_12 {dimension_numbers = #tpu.dot_dimension_numbers<[1], [0], [0], [1], [0, 0, 1, 1], [], []>} : vector<8x32xf32>, vector<32x4xf32>, vector<8x4xf32> -> vector<8x4xf32>
    %c32_13 = arith.constant 32 : index
    %c0_14 = arith.constant 0 : index
    %17 = vector.load %arg4[%c32_13, %c0_14] : memref<33x4xf32, #tpu.memory_space<vmem>>, vector<1x4xf32>
    %18 = vector.broadcast %17 : vector<1x4xf32> to vector<8x4xf32>
    %19 = arith.addf %16, %18 : vector<8x4xf32>
    %c0_15 = arith.constant 0 : index
    %c0_16 = arith.constant 0 : index
    %20 = vector.load %arg5[%c0_15, %c0_16] : memref<8x4xf32, #tpu.memory_space<vmem>>, vector<8x4xf32>
    tpu.vector_store %arg5[%c0_15, %c0_16], %19 {strides = array<i32>} : memref<8x4xf32, #tpu.memory_space<vmem>>, vector<8x4xf32>,
    return
  }
  func.func @transform_0(%arg0: i32) -> (i32, i32) {
    %c0_i32 = arith.constant 0 : i32
    %c0_i32_0 = arith.constant 0 : i32
    return %arg0, %c0_i32 : i32, i32
  }
  func.func @transform_1(%arg0: i32) -> (i32, i32) {
    %c0_i32 = arith.constant 0 : i32
    %c0_i32_0 = arith.constant 0 : i32
    %c0_i32_1 = arith.constant 0 : i32
    return %c0_i32, %c0_i32_0 : i32, i32
  }
  func.func @transform_2(%arg0: i32) -> (i32, i32) {
    %c0_i32 = arith.constant 0 : i32
    %c0_i32_0 = arith.constant 0 : i32
    %c0_i32_1 = arith.constant 0 : i32
    return %c0_i32, %c0_i32_0 : i32, i32
  }
  func.func @transform_3(%arg0: i32) -> (i32, i32) {
    %c0_i32 = arith.constant 0 : i32
    %c0_i32_0 = arith.constant 0 : i32
    %c0_i32_1 = arith.constant 0 : i32
    return %c0_i32, %c0_i32_0 : i32, i32
  }
  func.func @transform_4(%arg0: i32) -> (i32, i32) {
    %c0_i32 = arith.constant 0 : i32
    %c0_i32_0 = arith.constant 0 : i32
    return %arg0, %c0_i32 : i32, i32
  }
}

</mosaic_0001>

<bundles_post_ra>
// kernel: mlp_forward.1
= control target key start
LH: loop header
LB: loop body
LE: loop exit
PB: predicated region body
PF: predicated region fallthrough
CT: control target
= control target key end

     0   :  { %vm24_vm0 = vcmask 64512   ;;  %v331_v0 = vmov 0.0   ;;  %vm332_vm1 = vmmov 0   ;;  %v333_v4 = vmov 0.0|0.0   ;;  %s401_s1 = inlined_call_operand.vmem [shape: f32[9,32], index: 1, kind: input, shape index: {}]   ;;  %s402_s0 = inlined_call_operand.vmem [shape: f32[8,8], index: 0, kind: input, shape index: {}]   ;;  %s403_s2 = inlined_call_operand.vmem [shape: f32[33,32], index: 2, kind: input, shape index: {}]   ;;  %s404_s3 = inlined_call_operand.vmem [shape: f32[33,4], index: 3, kind: input, shape index: {}]   ;;  %s405_s4 = inlined_call_operand.vmem [shape: f32[8,4], index: 4, kind: output, shape index: {}]  }
   0x1   :  { %289 = vmatprep.subr.mxu0 %v331_v0  ;;  %v18_v1 = vld [vmem:[%s401_s1] sm:$0xff]  ;;  %291 = vmatprep.mubr.msk.f32.mxu0 %vm332_vm1, %v331_v0  ;;  %v100_v5 = vld [vmem:[%s403_s2 + $0x8] sm:$0xff]  ;;  %v101_v7 = vld [vmem:[%s403_s2 + $0x10] sm:$0xff]  ;;  %vm108_vm2 = vcmask 261120   ;;  %vm265_vm3 = vcmask 31744  }
   0x2   :  { %v17_v2 = vld [vmem:[%s402_s0] sm:$0xff]  ;;  %290 = vmatpush3.msra.mxu0 %v18_v1  ;;  %316 = vmatprep.subr.bf16.mxu1 %v333_v4  ;;  %v102_v8 = vld [vmem:[%s403_s2 + $0x18] sm:$0xff]  ;;  %v184_v11 = vld [vmem:[%s404_s3 + $0x8] sm:$0xff] }
   0x3   :  { %v99_v3 = vld [vmem:[%s403_s2] sm:$0xff]  ;;  %292 = vmatmul.mubr.msk.f32.vlgmr.msra.gmra.mrb[0].mxu0 %vm24_vm0, %v17_v2  ;;  %302 = vmatprep.mubr.msk.f32.mxu1 %vm332_vm1, %v331_v0  ;;  %v320_v9 = vpack.c.bf16 %v102_v8, %v101_v7  ;;  %v271_v13 = vld [vmem:[%s401_s1 + $0x8] ss:$0 sm:$0xff]  ;;  %v185_v18 = vld [vmem:[%s404_s3 + $0x10] sm:$0xff] }
   0x4   :  { %v317_v6 = vpack.c.bf16 %v100_v5, %v99_v3  ;;  %322 = vmatprep.subr.bf16.mxu0 %v333_v4  ;;  %313 = vmatprep.mubr.msk.f32.mxu0 %vm332_vm1, %v331_v0  ;;  %v183_v10 = vld [vmem:[%s404_s3] sm:$0xff]  ;;  %v186_v19 = vld [vmem:[%s404_s3 + $0x18] sm:$0xff] }
   0x5   :  { %v323_v12 = vpack.c.bf16 %v184_v11, %v183_v10  ;;  %v326_v20 = vpack.c.bf16 %v186_v19, %v185_v18  ;;  %v273_v21 = vld [vmem:[%s403_s2 + $0x20] ss:$0 sm:$0xff] }
   0x6   :  { %318 = vmatpush3.bf16.msra.mxu1 %v317_v6  ;;  %v275_v26 = vld [vmem:[%s404_s3 + $0x20] ss:$0 sm:$0xff] }
   0x7   :  { %319 = vmatprep.subr.bf16.mxu1 %v333_v4  ;;  %324 = vmatpush3.bf16.msra.mxu0 %v323_v12 }
   0x8   :  { %325 = vmatprep.subr.bf16.mxu0 %v333_v4 }
   0xa   :  { %321 = vmatpush3.bf16.msra.mxu1 %v320_v9 }
   0xb   :  { %327 = vmatpush3.bf16.msra.mxu0 %v326_v20 }
  0xd6   :  { %v94_v14 = vpop.f32.mrb[0].mxu0 }
  0xd7   :  { %v95_v15 = vadd.f32 %v271_v13, %v94_v14  ;;  %v293_v16 = vpop.f32.mrb[1].mxu0 }
  0xd9   :  { %v98_v17 = vmax.f32 %v95_v15, 0.0 }
  0xdb   :  { %303 = vmatmul.mubr.msk.f32.vlgmr.msra.gmra.mrb[0].mxu1 %vm108_vm2, %v98_v17 }
 0x1ae   :  { %v178_v22 = vpop.f32.mrb[0].mxu1 }
 0x1af   :  { %v179_v23 = vadd.f32 %v273_v21, %v178_v22  ;;  %v304_v24 = vpop.f32.mrb[1].mxu1 }
 0x1b1   :  { %v182_v25 = vmax.f32 %v179_v23, 0.0 }
 0x1b3   :  { %314 = vmatmul.mubr.msk.f32.vlgmr.msra.gmra.mrb[2].mxu0 %vm108_vm2, %v182_v25 }
 0x286   :  { %v261_v27 = vpop.f32.mrb[2].mxu0 }
 0x287   :  { %v262_v28 = vadd.f32 %v275_v26, %v261_v27  ;;  %v315_v29 = vpop.f32.mrb[3].mxu0 }
 0x289   :  { %266 = vst.msk [vmem:[%s405_s4] sm:$0xff] %vm265_vm3, %v262_v28 }

</bundles_post_ra>
